<compile_context>
chip_gen: v5e
topology: v5e:2x2
jax: 0.10.0
libtpu: 0.0.40
codegen_flags: <defaults>
</compile_context>

<pallas_src>
import jax
import jax.numpy as jnp
from jax import lax
from jax.experimental import pallas as pl
from jax.experimental.pallas import tpu as pltpu


# Sequences up to this (static) length are fully unrolled with static slices.
_FULL_UNROLL_LIMIT = 64


def melody_lstm_kernel(
    tokens_ref,        # (S, 1)   int32   pitch token ids
    emb_ref,           # (V, E)   f32     embedding table
    w_ih_ref,          # (E, 4H)  bf16    weight_ih_l0 transposed
    w_hh_ref,          # (H, 4H)  f32     weight_hh_l0 transposed
    b_ref,             # (1, 4H)  f32     bias_ih + bias_hh
    w_heads_ref,       # (H, P+2) bf16    [w_pitch | w_dur | w_off]
    b_heads_ref,       # (1, P+2) f32     [b_pitch | b_dur | b_off]
    pitch_out_ref,     # (S, P)   f32
    dur_out_ref,       # (S, 1)   f32
    off_out_ref,       # (S, 1)   f32
    xw_scratch,        # (S, 4H)  f32 VMEM  hoisted input projection
    lstm_out_scratch,  # (S, H)   f32 VMEM
):
    seq_len = tokens_ref.shape[0]
    vocab = emb_ref.shape[0]
    hidden = w_hh_ref.shape[0]
    pitch_range = pitch_out_ref.shape[1]

    # ---- embedding via one-hot matmul (exact f32 row selection, in-kernel) --
    lane_v = lax.broadcasted_iota(jnp.int32, (seq_len, vocab), 1)
    onehot = (tokens_ref[...] == lane_v).astype(jnp.float32)          # (S, V)
    embeds = jnp.dot(onehot, emb_ref[...],
                     preferred_element_type=jnp.float32)              # (S, E)

    # ---- hoisted input projection for all timesteps (bf16 MXU, f32 acc) -----
    xw_scratch[...] = (
        jnp.dot(embeds.astype(jnp.bfloat16), w_ih_ref[...],
                preferred_element_type=jnp.float32)
        + b_ref[...]
    )                                                                 # (S, 4H)

    # per-lane activation selector: tanh for g-gate lanes [2H,3H), sigmoid else
    lane_g = lax.broadcasted_iota(jnp.int32, (1, 4 * hidden), 1)
    is_tanh_lane = (lane_g >= 2 * hidden) & (lane_g < 3 * hidden)

    w_hh = w_hh_ref[...]  # hoist recurrent-weight load out of the loop

    def step(t, h, c):
        # per-step critical path: one (1,H)@(H,4H) matmul + elementwise
        gates = xw_scratch[pl.ds(t, 1), :] + jnp.dot(
            h, w_hh, preferred_element_type=jnp.float32)              # (1, 4H)
        # two full-width EUP launches instead of four sliced ones
        act = jnp.where(is_tanh_lane, jnp.tanh(gates), jax.nn.sigmoid(gates))
        i_g = act[:, 0 * hidden:1 * hidden]
        f_g = act[:, 1 * hidden:2 * hidden]
        g_g = act[:, 2 * hidden:3 * hidden]
        o_g = act[:, 3 * hidden:4 * hidden]
        c_new = f_g * c + i_g * g_g
        h_new = o_g * jnp.tanh(c_new)
        lstm_out_scratch[pl.ds(t, 1), :] = h_new
        return h_new, c_new

    h0 = jnp.zeros((1, hidden), jnp.float32)
    c0 = jnp.zeros((1, hidden), jnp.float32)

    if seq_len <= _FULL_UNROLL_LIMIT:
        # full unroll: static slice indices, h/c live in vregs
        h, c = h0, c0
        for t in range(seq_len):
            h, c = step(t, h, c)
    else:
        def body(t, carry):
            return step(t, *carry)
        lax.fori_loop(0, seq_len, body, (h0, c0), unroll=8)

    # ---- fused heads: one lane-dense (S,H)@(H,P+2) matmul -------------------
    lstm_out = lstm_out_scratch[...]                                  # (S, H)
    heads = (
        jnp.dot(lstm_out.astype(jnp.bfloat16), w_heads_ref[...],
                preferred_element_type=jnp.float32)
        + b_heads_ref[...]
    )                                                                 # (S,P+2)

    # pitch head + numerically stable log_softmax (dim=1)
    pitch = heads[:, :pitch_range]
    m = jnp.max(pitch, axis=1, keepdims=True)
    z = pitch - m
    lse = jnp.log(jnp.sum(jnp.exp(z), axis=1, keepdims=True))
    pitch_out_ref[...] = z - lse

    # duration / offset heads + softplus
    # (stable max(x,0)+log1p(exp(-|x|)); torch.softplus switches to identity
    #  above threshold=20 — agrees to float precision, not bit-identical)
    do = heads[:, pitch_range:pitch_range + 2]
    do_sp = jnp.maximum(do, 0.0) + jnp.log1p(jnp.exp(-jnp.abs(do)))
    dur_out_ref[...] = do_sp[:, 0:1]
    off_out_ref[...] = do_sp[:, 1:2]


def melody_lstm_events_forward(tokens, params):
    """tokens: int32 (seq_len,) pitch indices in [0, pitch_range)."""
    seq_len = tokens.shape[0]
    hidden = params["w_hh"].shape[0]
    pitch_range = params["embedding"].shape[0]

    # pack the three heads into one lane-contiguous weight (H, P+2)
    w_heads = jnp.concatenate(
        [params["w_pitch"], params["w_dur"], params["w_off"]], axis=1)
    b_heads = jnp.concatenate(
        [params["b_pitch"], params["b_dur"], params["b_off"]], axis=1)

    vmem = pl.BlockSpec(memory_space=pltpu.MemorySpace.VMEM)
    out_shapes = (
        jax.ShapeDtypeStruct((seq_len, pitch_range), jnp.float32),
        jax.ShapeDtypeStruct((seq_len, 1), jnp.float32),
        jax.ShapeDtypeStruct((seq_len, 1), jnp.float32),
    )

    return pl.pallas_call(
        melody_lstm_kernel,
        out_shape=out_shapes,
        in_specs=[vmem] * 7,
        out_specs=(vmem, vmem, vmem),
        scratch_shapes=[
            pltpu.VMEM((seq_len, 4 * hidden), jnp.float32),  # hoisted xW + b
            pltpu.VMEM((seq_len, hidden), jnp.float32),      # lstm_out
        ],
    )(
        tokens.reshape(seq_len, 1).astype(jnp.int32),
        params["embedding"].astype(jnp.float32),
        params["w_ih"].astype(jnp.bfloat16),     # bf16 MXU operand
        params["w_hh"].astype(jnp.float32),      # f32 recurrence
        params["b_lstm"].astype(jnp.float32),
        w_heads.astype(jnp.bfloat16),            # bf16 MXU operand
        b_heads.astype(jnp.float32),
    )


def reference_forward(tokens, params):
    """Pure-JAX f32 reference matching the PyTorch module."""
    hidden = params["w_hh"].shape[0]
    emb = params["embedding"][tokens].astype(jnp.float32)             # (S, E)

    def step(carry, x):
        h, c = carry
        gates = x @ params["w_ih"] + h @ params["w_hh"] + params["b_lstm"][0]
        i = jax.nn.sigmoid(gates[0 * hidden:1 * hidden])
        f = jax.nn.sigmoid(gates[1 * hidden:2 * hidden])
        g = jnp.tanh(gates[2 * hidden:3 * hidden])
        o = jax.nn.sigmoid(gates[3 * hidden:4 * hidden])
        c = f * c + i * g
        h = o * jnp.tanh(c)
        return (h, c), h

    init = (jnp.zeros(hidden, jnp.float32), jnp.zeros(hidden, jnp.float32))
    _, hs = lax.scan(step, init, emb)                                  # (S, H)

    pitch = jax.nn.log_softmax(hs @ params["w_pitch"] + params["b_pitch"], axis=1)
    dur = jax.nn.softplus(hs @ params["w_dur"] + params["b_dur"])
    off = jax.nn.softplus(hs @ params["w_off"] + params["b_off"])
    return pitch, dur, off


def init_params(key, pitch_range, embedding_size, hidden_size):
    """Deterministic synthetic parameters (PyTorch-style uniform init)."""
    ks = jax.random.split(key, 12)
    s = 1.0 / jnp.sqrt(hidden_size)

    def u(k, shape, scale):
        return jax.random.uniform(k, shape, jnp.float32, -scale, scale)

    return {
        "embedding": jax.random.normal(ks[0], (pitch_range, embedding_size),
                                       jnp.float32),
        # LSTM weights stored transposed: (in, 4H); gate order i, f, g, o
        "w_ih": u(ks[1], (embedding_size, 4 * hidden_size), s),
        "w_hh": u(ks[2], (hidden_size, 4 * hidden_size), s),
        "b_lstm": u(ks[3], (1, 4 * hidden_size), s)
                  + u(ks[4], (1, 4 * hidden_size), s),   # b_ih + b_hh
        "w_pitch": u(ks[5], (hidden_size, pitch_range), s),
        "b_pitch": u(ks[6], (1, pitch_range), s),
        "w_dur": u(ks[7], (hidden_size, 1), s),
        "b_dur": u(ks[8], (1, 1), s),
        "w_off": u(ks[9], (hidden_size, 1), s),
        "b_off": u(ks[10], (1, 1), s),
    }


if __name__ == "__main__":
    pitch_range = 16
    embedding_size = 32
    hidden_size = 32
    seq_len = 8

    key = jax.random.PRNGKey(0)
    pkey, tkey = jax.random.split(key)
    params = init_params(pkey, pitch_range, embedding_size, hidden_size)
    tokens = jax.random.randint(tkey, (seq_len,), 0, pitch_range, jnp.int32)

    pitch_scores, duration, offset = jax.block_until_ready(
        melody_lstm_events_forward(tokens, params)
    )

    assert pitch_scores.shape == (seq_len, pitch_range)
    assert duration.shape == (seq_len, 1)
    assert offset.shape == (seq_len, 1)
    # log_softmax rows must (approximately) sum to 1 in prob space
    assert jnp.allclose(jnp.sum(jnp.exp(pitch_scores), axis=1), 1.0, atol=1e-4)

    # loose comparison vs pure-f32 reference (kernel uses bf16 MXU operands)
    ref_pitch, ref_dur, ref_off = reference_forward(tokens, params)
    assert jnp.allclose(pitch_scores, ref_pitch, atol=1e-1)
    assert jnp.allclose(duration, ref_dur, atol=1e-1)
    assert jnp.allclose(offset, ref_off, atol=1e-1)

    print("KERNEL_OK")
</pallas_src>

<mosaic_0001>
module attributes {stable_mosaic.version = 11 : i64} {
  func.func @melody_lstm_kernel(%arg0: memref<8x1xi32, #tpu.memory_space<vmem>>, %arg1: memref<16x32xf32, #tpu.memory_space<vmem>>, %arg2: memref<32x128xbf16, #tpu.memory_space<vmem>>, %arg3: memref<32x128xf32, #tpu.memory_space<vmem>>, %arg4: memref<1x128xf32, #tpu.memory_space<vmem>>, %arg5: memref<32x18xbf16, #tpu.memory_space<vmem>>, %arg6: memref<1x18xf32, #tpu.memory_space<vmem>>, %arg7: memref<8x16xf32, #tpu.memory_space<vmem>>, %arg8: memref<8x1xf32, #tpu.memory_space<vmem>>, %arg9: memref<8x1xf32, #tpu.memory_space<vmem>>, %arg10: memref<8x128xf32, #tpu.memory_space<vmem>>, %arg11: memref<8x32xf32, #tpu.memory_space<vmem>>) attributes {dimension_semantics = [], scalar_prefetch = 0 : i64, scratch_operands = 2 : i64, tpu.core_type = #tpu.core_type<tc>} {
    %0 = tpu.iota {dimensions = array<i32: 1>} : vector<8x16xi32>
    %c0 = arith.constant 0 : index
    %c0_0 = arith.constant 0 : index
    %1 = vector.load %arg0[%c0, %c0_0] : memref<8x1xi32, #tpu.memory_space<vmem>>, vector<8x1xi32>
    %2 = vector.broadcast %1 : vector<8x1xi32> to vector<8x16xi32>
    %3 = arith.cmpi eq, %2, %0 : vector<8x16xi32>
    %4 = arith.extui %3 : vector<8x16xi1> to vector<8x16xi32>
    %5 = arith.sitofp %4 : vector<8x16xi32> to vector<8x16xf32>
    %c0_1 = arith.constant 0 : index
    %c0_2 = arith.constant 0 : index
    %6 = vector.load %arg1[%c0_1, %c0_2] : memref<16x32xf32, #tpu.memory_space<vmem>>, vector<16x32xf32>
    %cst = arith.constant dense<0.000000e+00> : vector<8x32xf32>
    %7 = tpu.matmul %5, %6, %cst {dimension_numbers = #tpu.dot_dimension_numbers<[1], [0], [0], [1], [0, 0, 1, 1], [], []>} : vector<8x16xf32>, vector<16x32xf32>, vector<8x32xf32> -> vector<8x32xf32>
    %8 = arith.truncf %7 : vector<8x32xf32> to vector<8x32xbf16>
    %c0_3 = arith.constant 0 : index
    %c0_4 = arith.constant 0 : index
    %9 = vector.load %arg2[%c0_3, %c0_4] : memref<32x128xbf16, #tpu.memory_space<vmem>>, vector<32x128xbf16>
    %cst_5 = arith.constant dense<0.000000e+00> : vector<8x128xf32>
    %10 = tpu.matmul %8, %9, %cst_5 {dimension_numbers = #tpu.dot_dimension_numbers<[1], [0], [0], [1], [0, 0, 1, 1], [], []>} : vector<8x32xbf16>, vector<32x128xbf16>, vector<8x128xf32> -> vector<8x128xf32>
    %c0_6 = arith.constant 0 : index
    %c0_7 = arith.constant 0 : index
    %11 = vector.load %arg4[%c0_6, %c0_7] : memref<1x128xf32, #tpu.memory_space<vmem>>, vector<1x128xf32>
    %12 = vector.broadcast %11 : vector<1x128xf32> to vector<8x128xf32>
    %13 = arith.addf %10, %12 : vector<8x128xf32>
    %c0_8 = arith.constant 0 : index
    %c0_9 = arith.constant 0 : index
    %14 = vector.load %arg10[%c0_8, %c0_9] : memref<8x128xf32, #tpu.memory_space<vmem>>, vector<8x128xf32>
    tpu.vector_store %arg10[%c0_8, %c0_9], %13 {strides = array<i32>} : memref<8x128xf32, #tpu.memory_space<vmem>>, vector<8x128xf32>,
    %15 = tpu.iota {dimensions = array<i32: 1>} : vector<1x128xi32>
    %c64_i32 = arith.constant 64 : i32
    %16 = vector.broadcast %c64_i32 : i32 to vector<1x128xi32>
    %17 = arith.cmpi sge, %15, %16 : vector<1x128xi32>
    %c96_i32 = arith.constant 96 : i32
    %18 = vector.broadcast %c96_i32 : i32 to vector<1x128xi32>
    %19 = arith.cmpi slt, %15, %18 : vector<1x128xi32>
    %20 = arith.andi %17, %19 : vector<1x128xi1>
    %c0_10 = arith.constant 0 : index
    %c0_11 = arith.constant 0 : index
    %21 = vector.load %arg3[%c0_10, %c0_11] : memref<32x128xf32, #tpu.memory_space<vmem>>, vector<32x128xf32>
    %cst_12 = arith.constant 0.000000e+00 : f32
    %22 = vector.broadcast %cst_12 : f32 to vector<1x32xf32>
    %cst_13 = arith.constant 0.000000e+00 : f32
    %23 = vector.broadcast %cst_13 : f32 to vector<1x32xf32>
    %c0_14 = arith.constant 0 : index
    %c0_15 = arith.constant 0 : index
    %24 = vector.load %arg10[%c0_14, %c0_15] : memref<8x128xf32, #tpu.memory_space<vmem>>, vector<1x128xf32>
    %cst_16 = arith.constant dense<0.000000e+00> : vector<1x128xf32>
    %25 = tpu.matmul %22, %21, %cst_16 {dimension_numbers = #tpu.dot_dimension_numbers<[1], [0], [0], [1], [0, 0, 1, 1], [], []>} : vector<1x32xf32>, vector<32x128xf32>, vector<1x128xf32> -> vector<1x128xf32>
    %26 = arith.addf %24, %25 : vector<1x128xf32>
    %27 = math.tanh %26 : vector<1x128xf32>
    %28 = arith.negf %26 : vector<1x128xf32>
    %29 = math.exp %28 : vector<1x128xf32>
    %cst_17 = arith.constant 1.000000e+00 : f32
    %30 = vector.broadcast %cst_17 : f32 to vector<1x128xf32>
    %31 = arith.addf %30, %29 : vector<1x128xf32>
    %32 = arith.divf %30, %31 : vector<1x128xf32>
    %33 = arith.select %20, %27, %32 : vector<1x128xi1>, vector<1x128xf32>
    %34 = vector.extract_strided_slice %33 {offsets = [0, 0], sizes = [1, 32], strides = [1, 1]} : vector<1x128xf32> to vector<1x32xf32>
    %35 = vector.extract_strided_slice %33 {offsets = [0, 32], sizes = [1, 32], strides = [1, 1]} : vector<1x128xf32> to vector<1x32xf32>
    %36 = vector.extract_strided_slice %33 {offsets = [0, 64], sizes = [1, 32], strides = [1, 1]} : vector<1x128xf32> to vector<1x32xf32>
    %37 = vector.extract_strided_slice %33 {offsets = [0, 96], sizes = [1, 32], strides = [1, 1]} : vector<1x128xf32> to vector<1x32xf32>
    %38 = arith.mulf %35, %23 : vector<1x32xf32>
    %39 = arith.mulf %34, %36 : vector<1x32xf32>
    %40 = arith.addf %38, %39 : vector<1x32xf32>
    %41 = math.tanh %40 : vector<1x32xf32>
    %42 = arith.mulf %37, %41 : vector<1x32xf32>
    %c0_18 = arith.constant 0 : index
    %c0_19 = arith.constant 0 : index
    %43 = vector.load %arg11[%c0_18, %c0_19] : memref<8x32xf32, #tpu.memory_space<vmem>>, vector<1x32xf32>
    tpu.vector_store %arg11[%c0_18, %c0_19], %42 {strides = array<i32>} : memref<8x32xf32, #tpu.memory_space<vmem>>, vector<1x32xf32>,
    %c1 = arith.constant 1 : index
    %c0_20 = arith.constant 0 : index
    %44 = vector.load %arg10[%c1, %c0_20] : memref<8x128xf32, #tpu.memory_space<vmem>>, vector<1x128xf32>
    %cst_21 = arith.constant dense<0.000000e+00> : vector<1x128xf32>
    %45 = tpu.matmul %42, %21, %cst_21 {dimension_numbers = #tpu.dot_dimension_numbers<[1], [0], [0], [1], [0, 0, 1, 1], [], []>} : vector<1x32xf32>, vector<32x128xf32>, vector<1x128xf32> -> vector<1x128xf32>
    %46 = arith.addf %44, %45 : vector<1x128xf32>
    %47 = math.tanh %46 : vector<1x128xf32>
    %48 = arith.negf %46 : vector<1x128xf32>
    %49 = math.exp %48 : vector<1x128xf32>
    %cst_22 = arith.constant 1.000000e+00 : f32
    %50 = vector.broadcast %cst_22 : f32 to vector<1x128xf32>
    %51 = arith.addf %50, %49 : vector<1x128xf32>
    %52 = arith.divf %50, %51 : vector<1x128xf32>
    %53 = arith.select %20, %47, %52 : vector<1x128xi1>, vector<1x128xf32>
    %54 = vector.extract_strided_slice %53 {offsets = [0, 0], sizes = [1, 32], strides = [1, 1]} : vector<1x128xf32> to vector<1x32xf32>
    %55 = vector.extract_strided_slice %53 {offsets = [0, 32], sizes = [1, 32], strides = [1, 1]} : vector<1x128xf32> to vector<1x32xf32>
    %56 = vector.extract_strided_slice %53 {offsets = [0, 64], sizes = [1, 32], strides = [1, 1]} : vector<1x128xf32> to vector<1x32xf32>
    %57 = vector.extract_strided_slice %53 {offsets = [0, 96], sizes = [1, 32], strides = [1, 1]} : vector<1x128xf32> to vector<1x32xf32>
    %58 = arith.mulf %55, %40 : vector<1x32xf32>
    %59 = arith.mulf %54, %56 : vector<1x32xf32>
    %60 = arith.addf %58, %59 : vector<1x32xf32>
    %61 = math.tanh %60 : vector<1x32xf32>
    %62 = arith.mulf %57, %61 : vector<1x32xf32>
    %c1_23 = arith.constant 1 : index
    %c0_24 = arith.constant 0 : index
    %63 = vector.load %arg11[%c1_23, %c0_24] : memref<8x32xf32, #tpu.memory_space<vmem>>, vector<1x32xf32>
    tpu.vector_store %arg11[%c1_23, %c0_24], %62 {strides = array<i32>} : memref<8x32xf32, #tpu.memory_space<vmem>>, vector<1x32xf32>,
    %c2 = arith.constant 2 : index
    %c0_25 = arith.constant 0 : index
    %64 = vector.load %arg10[%c2, %c0_25] : memref<8x128xf32, #tpu.memory_space<vmem>>, vector<1x128xf32>
    %cst_26 = arith.constant dense<0.000000e+00> : vector<1x128xf32>
    %65 = tpu.matmul %62, %21, %cst_26 {dimension_numbers = #tpu.dot_dimension_numbers<[1], [0], [0], [1], [0, 0, 1, 1], [], []>} : vector<1x32xf32>, vector<32x128xf32>, vector<1x128xf32> -> vector<1x128xf32>
    %66 = arith.addf %64, %65 : vector<1x128xf32>
    %67 = math.tanh %66 : vector<1x128xf32>
    %68 = arith.negf %66 : vector<1x128xf32>
    %69 = math.exp %68 : vector<1x128xf32>
    %cst_27 = arith.constant 1.000000e+00 : f32
    %70 = vector.broadcast %cst_27 : f32 to vector<1x128xf32>
    %71 = arith.addf %70, %69 : vector<1x128xf32>
    %72 = arith.divf %70, %71 : vector<1x128xf32>
    %73 = arith.select %20, %67, %72 : vector<1x128xi1>, vector<1x128xf32>
    %74 = vector.extract_strided_slice %73 {offsets = [0, 0], sizes = [1, 32], strides = [1, 1]} : vector<1x128xf32> to vector<1x32xf32>
    %75 = vector.extract_strided_slice %73 {offsets = [0, 32], sizes = [1, 32], strides = [1, 1]} : vector<1x128xf32> to vector<1x32xf32>
    %76 = vector.extract_strided_slice %73 {offsets = [0, 64], sizes = [1, 32], strides = [1, 1]} : vector<1x128xf32> to vector<1x32xf32>
    %77 = vector.extract_strided_slice %73 {offsets = [0, 96], sizes = [1, 32], strides = [1, 1]} : vector<1x128xf32> to vector<1x32xf32>
    %78 = arith.mulf %75, %60 : vector<1x32xf32>
    %79 = arith.mulf %74, %76 : vector<1x32xf32>
    %80 = arith.addf %78, %79 : vector<1x32xf32>
    %81 = math.tanh %80 : vector<1x32xf32>
    %82 = arith.mulf %77, %81 : vector<1x32xf32>
    %c2_28 = arith.constant 2 : index
    %c0_29 = arith.constant 0 : index
    %83 = vector.load %arg11[%c2_28, %c0_29] : memref<8x32xf32, #tpu.memory_space<vmem>>, vector<1x32xf32>
    tpu.vector_store %arg11[%c2_28, %c0_29], %82 {strides = array<i32>} : memref<8x32xf32, #tpu.memory_space<vmem>>, vector<1x32xf32>,
    %c3 = arith.constant 3 : index
    %c0_30 = arith.constant 0 : index
    %84 = vector.load %arg10[%c3, %c0_30] : memref<8x128xf32, #tpu.memory_space<vmem>>, vector<1x128xf32>
    %cst_31 = arith.constant dense<0.000000e+00> : vector<1x128xf32>
    %85 = tpu.matmul %82, %21, %cst_31 {dimension_numbers = #tpu.dot_dimension_numbers<[1], [0], [0], [1], [0, 0, 1, 1], [], []>} : vector<1x32xf32>, vector<32x128xf32>, vector<1x128xf32> -> vector<1x128xf32>
    %86 = arith.addf %84, %85 : vector<1x128xf32>
    %87 = math.tanh %86 : vector<1x128xf32>
    %88 = arith.negf %86 : vector<1x128xf32>
    %89 = math.exp %88 : vector<1x128xf32>
    %cst_32 = arith.constant 1.000000e+00 : f32
    %90 = vector.broadcast %cst_32 : f32 to vector<1x128xf32>
    %91 = arith.addf %90, %89 : vector<1x128xf32>
    %92 = arith.divf %90, %91 : vector<1x128xf32>
    %93 = arith.select %20, %87, %92 : vector<1x128xi1>, vector<1x128xf32>
    %94 = vector.extract_strided_slice %93 {offsets = [0, 0], sizes = [1, 32], strides = [1, 1]} : vector<1x128xf32> to vector<1x32xf32>
    %95 = vector.extract_strided_slice %93 {offsets = [0, 32], sizes = [1, 32], strides = [1, 1]} : vector<1x128xf32> to vector<1x32xf32>
    %96 = vector.extract_strided_slice %93 {offsets = [0, 64], sizes = [1, 32], strides = [1, 1]} : vector<1x128xf32> to vector<1x32xf32>
    %97 = vector.extract_strided_slice %93 {offsets = [0, 96], sizes = [1, 32], strides = [1, 1]} : vector<1x128xf32> to vector<1x32xf32>
    %98 = arith.mulf %95, %80 : vector<1x32xf32>
    %99 = arith.mulf %94, %96 : vector<1x32xf32>
    %100 = arith.addf %98, %99 : vector<1x32xf32>
    %101 = math.tanh %100 : vector<1x32xf32>
    %102 = arith.mulf %97, %101 : vector<1x32xf32>
    %c3_33 = arith.constant 3 : index
    %c0_34 = arith.constant 0 : index
    %103 = vector.load %arg11[%c3_33, %c0_34] : memref<8x32xf32, #tpu.memory_space<vmem>>, vector<1x32xf32>
    tpu.vector_store %arg11[%c3_33, %c0_34], %102 {strides = array<i32>} : memref<8x32xf32, #tpu.memory_space<vmem>>, vector<1x32xf32>,
    %c4 = arith.constant 4 : index
    %c0_35 = arith.constant 0 : index
    %104 = vector.load %arg10[%c4, %c0_35] : memref<8x128xf32, #tpu.memory_space<vmem>>, vector<1x128xf32>
    %cst_36 = arith.constant dense<0.000000e+00> : vector<1x128xf32>
    %105 = tpu.matmul %102, %21, %cst_36 {dimension_numbers = #tpu.dot_dimension_numbers<[1], [0], [0], [1], [0, 0, 1, 1], [], []>} : vector<1x32xf32>, vector<32x128xf32>, vector<1x128xf32> -> vector<1x128xf32>
    %106 = arith.addf %104, %105 : vector<1x128xf32>
    %107 = math.tanh %106 : vector<1x128xf32>
    %108 = arith.negf %106 : vector<1x128xf32>
    %109 = math.exp %108 : vector<1x128xf32>
    %cst_37 = arith.constant 1.000000e+00 : f32
    %110 = vector.broadcast %cst_37 : f32 to vector<1x128xf32>
    %111 = arith.addf %110, %109 : vector<1x128xf32>
    %112 = arith.divf %110, %111 : vector<1x128xf32>
    %113 = arith.select %20, %107, %112 : vector<1x128xi1>, vector<1x128xf32>
    %114 = vector.extract_strided_slice %113 {offsets = [0, 0], sizes = [1, 32], strides = [1, 1]} : vector<1x128xf32> to vector<1x32xf32>
    %115 = vector.extract_strided_slice %113 {offsets = [0, 32], sizes = [1, 32], strides = [1, 1]} : vector<1x128xf32> to vector<1x32xf32>
    %116 = vector.extract_strided_slice %113 {offsets = [0, 64], sizes = [1, 32], strides = [1, 1]} : vector<1x128xf32> to vector<1x32xf32>
    %117 = vector.extract_strided_slice %113 {offsets = [0, 96], sizes = [1, 32], strides = [1, 1]} : vector<1x128xf32> to vector<1x32xf32>
    %118 = arith.mulf %115, %100 : vector<1x32xf32>
    %119 = arith.mulf %114, %116 : vector<1x32xf32>
    %120 = arith.addf %118, %119 : vector<1x32xf32>
    %121 = math.tanh %120 : vector<1x32xf32>
    %122 = arith.mulf %117, %121 : vector<1x32xf32>
    %c4_38 = arith.constant 4 : index
    %c0_39 = arith.constant 0 : index
    %123 = vector.load %arg11[%c4_38, %c0_39] : memref<8x32xf32, #tpu.memory_space<vmem>>, vector<1x32xf32>
    tpu.vector_store %arg11[%c4_38, %c0_39], %122 {strides = array<i32>} : memref<8x32xf32, #tpu.memory_space<vmem>>, vector<1x32xf32>,
    %c5 = arith.constant 5 : index
    %c0_40 = arith.constant 0 : index
    %124 = vector.load %arg10[%c5, %c0_40] : memref<8x128xf32, #tpu.memory_space<vmem>>, vector<1x128xf32>
    %cst_41 = arith.constant dense<0.000000e+00> : vector<1x128xf32>
    %125 = tpu.matmul %122, %21, %cst_41 {dimension_numbers = #tpu.dot_dimension_numbers<[1], [0], [0], [1], [0, 0, 1, 1], [], []>} : vector<1x32xf32>, vector<32x128xf32>, vector<1x128xf32> -> vector<1x128xf32>
    %126 = arith.addf %124, %125 : vector<1x128xf32>
    %127 = math.tanh %126 : vector<1x128xf32>
    %128 = arith.negf %126 : vector<1x128xf32>
    %129 = math.exp %128 : vector<1x128xf32>
    %cst_42 = arith.constant 1.000000e+00 : f32
    %130 = vector.broadcast %cst_42 : f32 to vector<1x128xf32>
    %131 = arith.addf %130, %129 : vector<1x128xf32>
    %132 = arith.divf %130, %131 : vector<1x128xf32>
    %133 = arith.select %20, %127, %132 : vector<1x128xi1>, vector<1x128xf32>
    %134 = vector.extract_strided_slice %133 {offsets = [0, 0], sizes = [1, 32], strides = [1, 1]} : vector<1x128xf32> to vector<1x32xf32>
    %135 = vector.extract_strided_slice %133 {offsets = [0, 32], sizes = [1, 32], strides = [1, 1]} : vector<1x128xf32> to vector<1x32xf32>
    %136 = vector.extract_strided_slice %133 {offsets = [0, 64], sizes = [1, 32], strides = [1, 1]} : vector<1x128xf32> to vector<1x32xf32>
    %137 = vector.extract_strided_slice %133 {offsets = [0, 96], sizes = [1, 32], strides = [1, 1]} : vector<1x128xf32> to vector<1x32xf32>
    %138 = arith.mulf %135, %120 : vector<1x32xf32>
    %139 = arith.mulf %134, %136 : vector<1x32xf32>
    %140 = arith.addf %138, %139 : vector<1x32xf32>
    %141 = math.tanh %140 : vector<1x32xf32>
    %142 = arith.mulf %137, %141 : vector<1x32xf32>
    %c5_43 = arith.constant 5 : index
    %c0_44 = arith.constant 0 : index
    %143 = vector.load %arg11[%c5_43, %c0_44] : memref<8x32xf32, #tpu.memory_space<vmem>>, vector<1x32xf32>
    tpu.vector_store %arg11[%c5_43, %c0_44], %142 {strides = array<i32>} : memref<8x32xf32, #tpu.memory_space<vmem>>, vector<1x32xf32>,
    %c6 = arith.constant 6 : index
    %c0_45 = arith.constant 0 : index
    %144 = vector.load %arg10[%c6, %c0_45] : memref<8x128xf32, #tpu.memory_space<vmem>>, vector<1x128xf32>
    %cst_46 = arith.constant dense<0.000000e+00> : vector<1x128xf32>
    %145 = tpu.matmul %142, %21, %cst_46 {dimension_numbers = #tpu.dot_dimension_numbers<[1], [0], [0], [1], [0, 0, 1, 1], [], []>} : vector<1x32xf32>, vector<32x128xf32>, vector<1x128xf32> -> vector<1x128xf32>
    %146 = arith.addf %144, %145 : vector<1x128xf32>
    %147 = math.tanh %146 : vector<1x128xf32>
    %148 = arith.negf %146 : vector<1x128xf32>
    %149 = math.exp %148 : vector<1x128xf32>
    %cst_47 = arith.constant 1.000000e+00 : f32
    %150 = vector.broadcast %cst_47 : f32 to vector<1x128xf32>
    %151 = arith.addf %150, %149 : vector<1x128xf32>
    %152 = arith.divf %150, %151 : vector<1x128xf32>
    %153 = arith.select %20, %147, %152 : vector<1x128xi1>, vector<1x128xf32>
    %154 = vector.extract_strided_slice %153 {offsets = [0, 0], sizes = [1, 32], strides = [1, 1]} : vector<1x128xf32> to vector<1x32xf32>
    %155 = vector.extract_strided_slice %153 {offsets = [0, 32], sizes = [1, 32], strides = [1, 1]} : vector<1x128xf32> to vector<1x32xf32>
    %156 = vector.extract_strided_slice %153 {offsets = [0, 64], sizes = [1, 32], strides = [1, 1]} : vector<1x128xf32> to vector<1x32xf32>
    %157 = vector.extract_strided_slice %153 {offsets = [0, 96], sizes = [1, 32], strides = [1, 1]} : vector<1x128xf32> to vector<1x32xf32>
    %158 = arith.mulf %155, %140 : vector<1x32xf32>
    %159 = arith.mulf %154, %156 : vector<1x32xf32>
    %160 = arith.addf %158, %159 : vector<1x32xf32>
    %161 = math.tanh %160 : vector<1x32xf32>
    %162 = arith.mulf %157, %161 : vector<1x32xf32>
    %c6_48 = arith.constant 6 : index
    %c0_49 = arith.constant 0 : index
    %163 = vector.load %arg11[%c6_48, %c0_49] : memref<8x32xf32, #tpu.memory_space<vmem>>, vector<1x32xf32>
    tpu.vector_store %arg11[%c6_48, %c0_49], %162 {strides = array<i32>} : memref<8x32xf32, #tpu.memory_space<vmem>>, vector<1x32xf32>,
    %c7 = arith.constant 7 : index
    %c0_50 = arith.constant 0 : index
    %164 = vector.load %arg10[%c7, %c0_50] : memref<8x128xf32, #tpu.memory_space<vmem>>, vector<1x128xf32>
    %cst_51 = arith.constant dense<0.000000e+00> : vector<1x128xf32>
    %165 = tpu.matmul %162, %21, %cst_51 {dimension_numbers = #tpu.dot_dimension_numbers<[1], [0], [0], [1], [0, 0, 1, 1], [], []>} : vector<1x32xf32>, vector<32x128xf32>, vector<1x128xf32> -> vector<1x128xf32>
    %166 = arith.addf %164, %165 : vector<1x128xf32>
    %167 = math.tanh %166 : vector<1x128xf32>
    %168 = arith.negf %166 : vector<1x128xf32>
    %169 = math.exp %168 : vector<1x128xf32>
    %cst_52 = arith.constant 1.000000e+00 : f32
    %170 = vector.broadcast %cst_52 : f32 to vector<1x128xf32>
    %171 = arith.addf %170, %169 : vector<1x128xf32>
    %172 = arith.divf %170, %171 : vector<1x128xf32>
    %173 = arith.select %20, %167, %172 : vector<1x128xi1>, vector<1x128xf32>
    %174 = vector.extract_strided_slice %173 {offsets = [0, 0], sizes = [1, 32], strides = [1, 1]} : vector<1x128xf32> to vector<1x32xf32>
    %175 = vector.extract_strided_slice %173 {offsets = [0, 32], sizes = [1, 32], strides = [1, 1]} : vector<1x128xf32> to vector<1x32xf32>
    %176 = vector.extract_strided_slice %173 {offsets = [0, 64], sizes = [1, 32], strides = [1, 1]} : vector<1x128xf32> to vector<1x32xf32>
    %177 = vector.extract_strided_slice %173 {offsets = [0, 96], sizes = [1, 32], strides = [1, 1]} : vector<1x128xf32> to vector<1x32xf32>
    %178 = arith.mulf %175, %160 : vector<1x32xf32>
    %179 = arith.mulf %174, %176 : vector<1x32xf32>
    %180 = arith.addf %178, %179 : vector<1x32xf32>
    %181 = math.tanh %180 : vector<1x32xf32>
    %182 = arith.mulf %177, %181 : vector<1x32xf32>
    %c7_53 = arith.constant 7 : index
    %c0_54 = arith.constant 0 : index
    %183 = vector.load %arg11[%c7_53, %c0_54] : memref<8x32xf32, #tpu.memory_space<vmem>>, vector<1x32xf32>
    tpu.vector_store %arg11[%c7_53, %c0_54], %182 {strides = array<i32>} : memref<8x32xf32, #tpu.memory_space<vmem>>, vector<1x32xf32>,
    %c0_55 = arith.constant 0 : index
    %c0_56 = arith.constant 0 : index
    %184 = vector.load %arg11[%c0_55, %c0_56] : memref<8x32xf32, #tpu.memory_space<vmem>>, vector<8x32xf32>
    %185 = arith.truncf %184 : vector<8x32xf32> to vector<8x32xbf16>
    %c0_57 = arith.constant 0 : index
    %c0_58 = arith.constant 0 : index
    %186 = vector.load %arg5[%c0_57, %c0_58] : memref<32x18xbf16, #tpu.memory_space<vmem>>, vector<32x18xbf16>
    %cst_59 = arith.constant dense<0.000000e+00> : vector<8x18xf32>
    %187 = tpu.matmul %185, %186, %cst_59 {dimension_numbers = #tpu.dot_dimension_numbers<[1], [0], [0], [1], [0, 0, 1, 1], [], []>} : vector<8x32xbf16>, vector<32x18xbf16>, vector<8x18xf32> -> vector<8x18xf32>
    %c0_60 = arith.constant 0 : index
    %c0_61 = arith.constant 0 : index
    %188 = vector.load %arg6[%c0_60, %c0_61] : memref<1x18xf32, #tpu.memory_space<vmem>>, vector<1x18xf32>
    %189 = vector.broadcast %188 : vector<1x18xf32> to vector<8x18xf32>
    %190 = arith.addf %187, %189 : vector<8x18xf32>
    %191 = vector.extract_strided_slice %190 {offsets = [0, 0], sizes = [8, 16], strides = [1, 1]} : vector<8x18xf32> to vector<8x16xf32>
    %cst_62 = arith.constant dense<0xFF800000> : vector<8xf32>
    %192 = vector.multi_reduction <maximumf>, %191, %cst_62 [1] : vector<8x16xf32> to vector<8xf32>
    %193 = vector.shape_cast %192 : vector<8xf32> to vector<8x1xf32>
    %194 = vector.broadcast %193 : vector<8x1xf32> to vector<8x16xf32>
    %195 = arith.subf %191, %194 : vector<8x16xf32>
    %196 = math.exp %195 : vector<8x16xf32>
    %cst_63 = arith.constant dense<0.000000e+00> : vector<8xf32>
    %197 = vector.multi_reduction <add>, %196, %cst_63 [1] : vector<8x16xf32> to vector<8xf32>
    %198 = vector.shape_cast %197 : vector<8xf32> to vector<8x1xf32>
    %199 = math.log %198 : vector<8x1xf32>
    %200 = vector.broadcast %199 : vector<8x1xf32> to vector<8x16xf32>
    %201 = arith.subf %195, %200 : vector<8x16xf32>
    %c0_64 = arith.constant 0 : index
    %c0_65 = arith.constant 0 : index
    %202 = vector.load %arg7[%c0_64, %c0_65] : memref<8x16xf32, #tpu.memory_space<vmem>>, vector<8x16xf32>
    tpu.vector_store %arg7[%c0_64, %c0_65], %201 {strides = array<i32>} : memref<8x16xf32, #tpu.memory_space<vmem>>, vector<8x16xf32>,
    %203 = vector.extract_strided_slice %190 {offsets = [0, 16], sizes = [8, 2], strides = [1, 1]} : vector<8x18xf32> to vector<8x2xf32>
    %cst_66 = arith.constant 0.000000e+00 : f32
    %204 = vector.broadcast %cst_66 : f32 to vector<8x2xf32>
    %205 = arith.maximumf %203, %204 : vector<8x2xf32>
    %206 = math.absf %203 : vector<8x2xf32>
    %cst_67 = arith.constant 0.000000e+00 : f32
    %207 = vector.broadcast %cst_67 : f32 to vector<8x2xf32>
    %208 = arith.subf %207, %206 : vector<8x2xf32>
    %209 = math.exp %208 : vector<8x2xf32>
    %210 = math.log1p %209 : vector<8x2xf32>
    %211 = arith.addf %205, %210 : vector<8x2xf32>
    %212 = vector.extract_strided_slice %211 {offsets = [0, 0], sizes = [8, 1], strides = [1, 1]} : vector<8x2xf32> to vector<8x1xf32>
    %c0_68 = arith.constant 0 : index
    %c0_69 = arith.constant 0 : index
    %213 = vector.load %arg8[%c0_68, %c0_69] : memref<8x1xf32, #tpu.memory_space<vmem>>, vector<8x1xf32>
    tpu.vector_store %arg8[%c0_68, %c0_69], %212 {strides = array<i32>} : memref<8x1xf32, #tpu.memory_space<vmem>>, vector<8x1xf32>,
    %214 = vector.extract_strided_slice %211 {offsets = [0, 1], sizes = [8, 1], strides = [1, 1]} : vector<8x2xf32> to vector<8x1xf32>
    %c0_70 = arith.constant 0 : index
    %c0_71 = arith.constant 0 : index
    %215 = vector.load %arg9[%c0_70, %c0_71] : memref<8x1xf32, #tpu.memory_space<vmem>>, vector<8x1xf32>
    tpu.vector_store %arg9[%c0_70, %c0_71], %214 {strides = array<i32>} : memref<8x1xf32, #tpu.memory_space<vmem>>, vector<8x1xf32>,
    return
  }
}

</mosaic_0001>

<bundles_post_ra>
// kernel: tpu_custom_call.1
= control target key start
LH: loop header
LB: loop body
LE: loop exit
PB: predicated region body
PF: predicated region fallthrough
CT: control target
= control target key end

     0   :  { %15 = vsyncpa [#allocation5], 0  ;;  %s1206_s0 = inlined_call_operand.vmem [shape: s32[8,1], index: 0, kind: input, shape index: {}]   ;;  %s1207_s1 = inlined_call_operand.vmem [shape: f32[16,32], index: 1, kind: input, shape index: {}]   ;;  %s1208_s2 = inlined_call_operand.hbm [shape: bf16[32,128], index: 2, kind: input, shape index: {}]   ;;  %s1209_s3 = inlined_call_operand.hbm [shape: f32[32,128], index: 3, kind: input, shape index: {}]   ;;  %s1210_s4 = inlined_call_operand.vmem [shape: f32[1,128], index: 4, kind: input, shape index: {}]   ;;  %s1211_s5 = inlined_call_operand.vmem [shape: bf16[32,18], index: 5, kind: input, shape index: {}]   ;;  %s1212_s6 = inlined_call_operand.vmem [shape: f32[1,18], index: 6, kind: input, shape index: {}]   ;;  %s1213_s7 = inlined_call_operand.hbm [shape: f32[8,16], index: 7, kind: output, shape index: {0}]   ;;  %s1214_s8 = inlined_call_operand.vmem [shape: f32[8,1], index: 8, kind: output, shape index: {1}]   ;;  %s1215_s9 = inlined_call_operand.vmem [shape: f32[8,1], index: 9, kind: output, shape index: {2}]  }
   0x1   :  { %16 = vsyncpa [#allocation8], 0 }
   0x2   :  { %17 = vsyncpa [#allocation6], 0  ;;  %s26_s11 = sshll.u32 %s1208_s2, 4  ;;  %s988_s12 = smov [#allocation4]   ;;  %s27_s11 = int_to_ptr.hbm [resolvable:$true] %s26_s11 }
   0x3   :  { %s28_s13 = sshll.u32 %s988_s12, 4  ;;  %s39_s16 = sshll.u32 %s1209_s3, 4  ;;  %s29_s13 = int_to_ptr.vmem [resolvable:$true] %s28_s13  ;;  %s40_s16 = int_to_ptr.hbm [resolvable:$true] %s39_s16 }
   0x4   :  { %s989_s17 = smov 64   ;;  %s990_s18 = smov 4  }
   0x5   :  { %34 = dma.hbm_to_vmem [thread:$0]  %s27_s11, 256, %s29_s13, [#allocation5], %s989_s17, %s989_s17, %s990_s18  }
   0x6   :  { %s991_s19 = smov [#allocation7]   ;;  %s992_s21 = smov 128  }
   0x7   :  { %s41_s20 = sshll.u32 %s991_s19, 4  ;;  %s993_s22 = smov 8   ;;  %s42_s20 = int_to_ptr.vmem [resolvable:$true] %s41_s20 }
   0x8   :  { %47 = dma.hbm_to_vmem [thread:$0]  %s40_s16, 512, %s42_s20, [#allocation8], %s992_s21, %s992_s21, %s993_s22  }
   0x9   :  { %982 = dma.done.wait [#allocation5], 256  }
   0xa   :  { %983 = vsyncadd [#allocation5], 4294967040 }
   0xb   :  { %984 = dma.done.wait [#allocation8], 512  }
   0xc   :  { %985 = vsyncadd [#allocation8], 4294966784  ;;  %v994_v0 = vmov 0   ;;  %v65_v1 = vld [vmem:[%s1206_s0] sm:$0xff]  ;;  %v73_v2 = vld [vmem:[%s1207_s1 + $0x8] sm:$0xff]  ;;  %v63_v5 = vlaneseq  ;;  %vm74_vm0 = vcmask 130048  }
   0xd   :  { %835 = vset.pattern.permute.xlu0 %v994_v0  ;;  %92 = vmatpush.msra.mxu0 %v73_v2  ;;  %v72_v3 = vld [vmem:[%s1207_s1] sm:$0xff]  ;;  %v820_v4 = vld [vmem:[#allocation4 + $0x8] sm:$0xff]  ;;  %v995_v8 = vmov 0.0   ;;  %v819_v10 = vld [vmem:[#allocation4] sm:$0xff]  ;;  %vm119_vm2 = vcmask 261120   ;;  %vm211_vm10 = vcmask 253952  }
   0xe   :  { %67 = vperm.xlu0 %835, %v65_v1   ;;  %129 = vmatpush.bf16.msra.mxu1 %v820_v4  ;;  %v1067_v6 = vand.u32 127, %v63_v5  ;;  %v1071_v11 = vld [vmem:[#allocation7 + $0x18] sm:$0xff]  ;;  %v1074_v12 = vld [vmem:[#allocation7 + $0x10] sm:$0xff]  ;;  %v1080_v13 = vld [vmem:[#allocation7 + $0x8] sm:$0xff]  ;;  %s999_s16 = smov [#allocation9]  }
   0xf   :  { %93 = vmatpush.msra.mxu0 %v72_v3  ;;  %160 = vmatpush.msra.mxu2 %v1071_v11  ;;  %v1082_v14 = vld [vmem:[#allocation7] sm:$0xff]  ;;  %v822_v33 = vld [vmem:[%s1211_s5 + $0x8] sm:$0xff] }
  0x10   :  { %429 = vmatpush.msra.mxu3 %v1071_v11  ;;  %v836_v17 = vld [vmem:[%s1210_s4] ss:$0 sm:$0xff]  ;;  %vm137_vm3 = vcmp.ge.s32.totalorder %v1067_v6, 64  ;;  %vm138_vm4 = vcmp.lt.s32.totalorder %v1067_v6, 96  ;;  %s996_s4 = smov 32  }
  0x11   :  { %228 = vmatpush.msrb.mxu0 %v1071_v11  ;;  %161 = vmatpush.msra.mxu2 %v1074_v12  ;;  %vm1113_vm6 = vmand %vm137_vm3, %vm138_vm4 }
  0x12   :  { %130 = vmatpush.bf16.msra.mxu1 %v819_v10  ;;  %430 = vmatpush.msra.mxu3 %v1074_v12 }
  0x13   :  { %229 = vmatpush.msrb.mxu0 %v1074_v12  ;;  %162 = vmatpush.msra.mxu2 %v1080_v13 }
  0x14   :  { %431 = vmatpush.msra.mxu3 %v1080_v13 }
  0x15   :  { %230 = vmatpush.msrb.mxu0 %v1080_v13  ;;  %163 = vmatpush.msra.mxu2 %v1082_v14 }
  0x16   :  { %563 = vmatpush.msrb.mxu1 %v1071_v11  ;;  %164 = vmatmul.f32.vlgmr.msra.gmra.mxu2 %v995_v8 }
  0x17   :  { %231 = vmatpush.msrb.mxu0 %v1082_v14  ;;  %362 = vmatpush.msrb.mxu2 %v1071_v11 }
  0x18   :  { %564 = vmatpush.msrb.mxu1 %v1074_v12  ;;  %432 = vmatpush.msra.mxu3 %v1082_v14 }
  0x19   :  { %363 = vmatpush.msrb.mxu2 %v1074_v12 }
  0x1a   :  { %565 = vmatpush.msrb.mxu1 %v1080_v13  ;;  %713 = vmatpush.bf16.msrb.mxu3 %v822_v33 }
  0x1b   :  { %364 = vmatpush.msrb.mxu2 %v1080_v13 }
  0x1c   :  { %566 = vmatpush.msrb.mxu1 %v1082_v14 }
  0x1d   :  { %365 = vmatpush.msrb.mxu2 %v1082_v14 }
  0x1f   :  { %630 = vmatpush.msra.mxu2 %v1071_v11 }
  0x21   :  { %631 = vmatpush.msra.mxu2 %v1074_v12 }
  0x23   :  { %632 = vmatpush.msra.mxu2 %v1080_v13 }
  0x25   :  { %633 = vmatpush.msra.mxu2 %v1082_v14 }
  0x80   :  { %v68_v7 = vpop.permute.xlu0 %67 }
  0x81   :  { %vm69_vm1 = vcmp.eq.s32.totalorder %v68_v7, %v1067_v6 }
  0x82   :  { %v784_v9 = vsel %vm69_vm1, 1.0, %v995_v8 }
  0x83   :  { %785 = vmatmul.msk.f32.vlgmr.msra.gmra.mxu0 %vm74_vm0, %v784_v9 }
  0x84   :  { %295 = vmatpush.msra.mxu0 %v1071_v11 }
  0x86   :  { %296 = vmatpush.msra.mxu0 %v1074_v12 }
  0x88   :  { %297 = vmatpush.msra.mxu0 %v1080_v13 }
  0x8a   :  { %298 = vmatpush.msra.mxu0 %v1082_v14 }
  0x99   :  { %v165_v21 = vpop.f32.mrf.mxu2 }
 0x100   :  { %v95_v15 = vpop.f32.mrf.mxu0 }
 0x101   :  { %v98_v16 = vpack.c.bf16 %v95_v15, %v95_v15 }
 0x103   :  { %794 = vmatmul.msk.bf16.vlgmr.msra.gmra.mxu1 %vm119_vm2, %v98_v16 }
 0x180   :  { %v132_v18 = vpop.f32.mrf.mxu1 }
 0x181   :  { %v133_v19 = vadd.f32 %v836_v17, %v132_v18 }
 0x183   :  { %136 = vst [vmem:[#allocation2] sm:$0xff] %v133_v19 }
 0x188   :  { %v134_v20 = vpop.f32.mrf.mxu1 }
 0x18a   :  { %v144_v22 = vld [vmem:[#allocation2] sm:$0x1]  ;;  %v213_v49 = vld [vmem:[#allocation2 + $0x1] sm:$0x1] }
 0x18b   :  { %v168_v23 = vadd.f32 %v165_v21, %v144_v22 }
 0x18d   :  { %v795_v24 = vmul.f32 -1.442695, %v168_v23 }
 0x18f   :  { %838 = vpow2.f32 %v795_v24 }
 0x195   :  { %v839_v25 = vpop.eup %838 }
 0x196   :  { %v173_v26 = vadd.f32 1.0, %v839_v25 }
 0x198   :  { %840 = vrcp.f32 %v173_v26  ;;  %v185_v30 = vand.u32 2147483648, %v173_v26  ;;  %v183_v32 = vand.u32 2147483647, %v173_v26  ;;  %vm179_vm7 = vweird.f32 %v173_v26 }
 0x199   :  { %842 = vtanh.f32 %v168_v23 }
 0x19a   :  { %v186_v35 = vor.u32 1.1754944e-38, %v185_v30  ;;  %vm184_vm9 = vcmp.eq.f32.partialorder %v183_v32, 8.507059e+37 }
 0x19e   :  { %v841_v27 = vpop.eup %840 }
 0x19f   :  { %v175_v28 = vmul.f32 %v841_v27, %v173_v26  ;;  %vm180_vm5 = vweird.f32 %v841_v27  ;;  %v843_v37 = vpop.eup %842 }
 0x1a0   :  { %vm181_vm8 = vmor %vm179_vm7, %vm180_vm5 }
 0x1a1   :  { %v176_v29 = vsub.f32 1.0, %v175_v28 }
 0x1a3   :  { %v177_v31 = vmul.f32 %v841_v27, %v176_v29 }
 0x1a5   :  { %v178_v34 = vadd.f32 %v841_v27, %v177_v31 }
 0x1a7   :  { %v182_v36 = vsel %vm181_vm8, %v841_v27, %v178_v34 }
 0x1a8   :  { %v187_v38 = vsel %vm184_vm9, %v186_v35, %v182_v36 }
 0x1a9   :  { %v189_v39 = vsel %vm1113_vm6, %v843_v37, %v187_v38 }
 0x1aa   :  { %192 = vrot.lane.b32.xlu0 %v189_v39, %s989_s17  ;;  %v190_v42 = vmul.f32 0.0, %v189_v39 }
 0x21c   :  { %v193_v40 = vpop.permute.xlu0 %192 }
 0x21d   :  { %v195_v41 = vmul.f32 %v193_v40, %v189_v39  ;;  %v347_v40 = vld [vmem:[#allocation2 + $0x3] sm:$0x1] }
 0x21f   :  { %197 = vrot.lane.b32.xlu1 %v195_v41, %s996_s4 }
 0x291   :  { %v198_v43 = vpop.permute.xlu1 %197 }
 0x292   :  { %v200_v44 = vadd.f32 %v198_v43, %v190_v42 }
 0x294   :  { %844 = vtanh.f32 %v200_v44 }
 0x29a   :  { %v845_v45 = vpop.eup %844 }
 0x29b   :  { %203 = vrot.lane.b32.xlu1 %v845_v45, %s989_s17 }
 0x30d   :  { %v204_v46 = vpop.permute.xlu1 %203 }
 0x30e   :  { %v206_v47 = vmul.f32 %v204_v46, %v189_v39 }
 0x310   :  { %208 = vrot.lane.b32.xlu2 %v206_v47, %s996_s4 }
 0x36a   :  { %v209_v48 = vpop.permute.xlu2 %208 }
 0x36b   :  { %212 = vst.msk [vmem:[#allocation3] sm:$0x1] %vm211_vm10, %v209_v48  ;;  %796 = vmatmul.msk.f32.vlgmr.msrb.gmra.mxu0 %vm119_vm2, %v209_v48 }
 0x36c   :  { %496 = vmatpush.msrb.mxu0 %v1071_v11 }
 0x36e   :  { %497 = vmatpush.msrb.mxu0 %v1074_v12  ;;  %v280_v12 = vld [vmem:[#allocation2 + $0x2] sm:$0x1] }
 0x370   :  { %498 = vmatpush.msrb.mxu0 %v1080_v13 }
 0x372   :  { %499 = vmatpush.msrb.mxu0 %v1082_v14 }
 0x3e8   :  { %v233_v50 = vpop.f32.mrf.mxu0 }
 0x3e9   :  { %v236_v51 = vadd.f32 %v233_v50, %v213_v49 }
 0x3eb   :  { %v797_v52 = vmul.f32 -1.442695, %v236_v51 }
 0x3ed   :  { %846 = vpow2.f32 %v797_v52 }
 0x3f3   :  { %v847_v53 = vpop.eup %846 }
 0x3f4   :  { %v241_v54 = vadd.f32 1.0, %v847_v53 }
 0x3f6   :  { %848 = vrcp.f32 %v241_v54  ;;  %v253_v58 = vand.u32 2147483648, %v241_v54  ;;  %v251_v60 = vand.u32 2147483647, %v241_v54  ;;  %vm247_vm12 = vweird.f32 %v241_v54 }
 0x3f7   :  { %850 = vtanh.f32 %v236_v51 }
 0x3f8   :  { %v254_v62 = vor.u32 1.1754944e-38, %v253_v58  ;;  %vm252_vm14 = vcmp.eq.f32.partialorder %v251_v60, 8.507059e+37 }
 0x3fc   :  { %v849_v55 = vpop.eup %848 }
 0x3fd   :  { %v243_v56 = vmul.f32 %v849_v55, %v241_v54  ;;  %vm248_vm11 = vweird.f32 %v849_v55  ;;  %v851_v0 = vpop.eup %850 }
 0x3fe   :  { %vm249_vm13 = vmor %vm247_vm12, %vm248_vm11 }
 0x3ff   :  { %v244_v57 = vsub.f32 1.0, %v243_v56 }
 0x401   :  { %v245_v59 = vmul.f32 %v849_v55, %v244_v57 }
 0x403   :  { %v246_v61 = vadd.f32 %v849_v55, %v245_v59 }
 0x405   :  { %v250_v63 = vsel %vm249_vm13, %v849_v55, %v246_v61 }
 0x406   :  { %v255_v1 = vsel %vm252_vm14, %v254_v62, %v250_v63 }
 0x407   :  { %v257_v2 = vsel %vm1113_vm6, %v851_v0, %v255_v1 }
 0x408   :  { %260 = vrot.lane.b32.xlu2 %v257_v2, %s989_s17  ;;  %v258_v5 = vmul.f32 %v257_v2, %v200_v44 }
 0x462   :  { %v261_v3 = vpop.permute.xlu2 %260 }
 0x463   :  { %v263_v4 = vmul.f32 %v261_v3, %v257_v2  ;;  %v414_v3 = vld [vmem:[#allocation2 + $0x4] sm:$0x1] }
 0x465   :  { %265 = vrot.lane.b32.xlu0 %v263_v4, %s996_s4 }
 0x4d7   :  { %v266_v6 = vpop.permute.xlu0 %265 }
 0x4d8   :  { %v268_v7 = vadd.f32 %v266_v6, %v258_v5 }
 0x4da   :  { %852 = vtanh.f32 %v268_v7 }
 0x4e0   :  { %v853_v8 = vpop.eup %852 }
 0x4e1   :  { %271 = vrot.lane.b32.xlu1 %v853_v8, %s989_s17 }
 0x553   :  { %v272_v9 = vpop.permute.xlu1 %271 }
 0x554   :  { %v274_v10 = vmul.f32 %v272_v9, %v257_v2 }
 0x556   :  { %276 = vrot.lane.b32.xlu2 %v274_v10, %s996_s4 }
 0x5b0   :  { %v277_v11 = vpop.permute.xlu2 %276 }
 0x5b1   :  { %279 = vst.msk [vmem:[#allocation3 + $0x1] sm:$0x1] %vm211_vm10, %v277_v11  ;;  %798 = vmatmul.msk.f32.vlgmr.msra.gmra.mxu0 %vm119_vm2, %v277_v11 }
 0x62e   :  { %v300_v13 = vpop.f32.mrf.mxu0 }
 0x62f   :  { %v303_v14 = vadd.f32 %v300_v13, %v280_v12 }
 0x631   :  { %v799_v15 = vmul.f32 -1.442695, %v303_v14 }
 0x633   :  { %854 = vpow2.f32 %v799_v15 }
 0x639   :  { %v855_v16 = vpop.eup %854 }
 0x63a   :  { %v308_v17 = vadd.f32 1.0, %v855_v16 }
 0x63c   :  { %856 = vrcp.f32 %v308_v17  ;;  %v320_v21 = vand.u32 2147483648, %v308_v17  ;;  %v318_v23 = vand.u32 2147483647, %v308_v17  ;;  %vm314_vm1 = vweird.f32 %v308_v17 }
 0x63d   :  { %858 = vtanh.f32 %v303_v14 }
 0x63e   :  { %v321_v25 = vor.u32 1.1754944e-38, %v320_v21  ;;  %vm319_vm4 = vcmp.eq.f32.partialorder %v318_v23, 8.507059e+37 }
 0x642   :  { %v857_v18 = vpop.eup %856 }
 0x643   :  { %v310_v19 = vmul.f32 %v857_v18, %v308_v17  ;;  %vm315_vm15 = vweird.f32 %v857_v18  ;;  %v859_v27 = vpop.eup %858 }
 0x644   :  { %vm316_vm3 = vmor %vm314_vm1, %vm315_vm15 }
 0x645   :  { %v311_v20 = vsub.f32 1.0, %v310_v19 }
 0x647   :  { %v312_v22 = vmul.f32 %v857_v18, %v311_v20 }
 0x649   :  { %v313_v24 = vadd.f32 %v857_v18, %v312_v22 }
 0x64b   :  { %v317_v26 = vsel %vm316_vm3, %v857_v18, %v313_v24 }
 0x64c   :  { %v322_v28 = vsel %vm319_vm4, %v321_v25, %v317_v26 }
 0x64d   :  { %v324_v29 = vsel %vm1113_vm6, %v859_v27, %v322_v28 }
 0x64e   :  { %327 = vrot.lane.b32.xlu0 %v324_v29, %s989_s17  ;;  %v325_v32 = vmul.f32 %v324_v29, %v268_v7 }
 0x6c0   :  { %v328_v30 = vpop.permute.xlu0 %327 }
 0x6c1   :  { %v330_v31 = vmul.f32 %v328_v30, %v324_v29  ;;  %v481_v30 = vld [vmem:[#allocation2 + $0x5] sm:$0x1] }
 0x6c3   :  { %332 = vrot.lane.b32.xlu1 %v330_v31, %s996_s4 }
 0x735   :  { %v333_v34 = vpop.permute.xlu1 %332 }
 0x736   :  { %v335_v35 = vadd.f32 %v333_v34, %v325_v32 }
 0x738   :  { %860 = vtanh.f32 %v335_v35 }
 0x73e   :  { %v861_v36 = vpop.eup %860 }
 0x73f   :  { %338 = vrot.lane.b32.xlu2 %v861_v36, %s989_s17 }
 0x799   :  { %v339_v37 = vpop.permute.xlu2 %338 }
 0x79a   :  { %v341_v38 = vmul.f32 %v339_v37, %v324_v29 }
 0x79c   :  { %343 = vrot.lane.b32.xlu0 %v341_v38, %s996_s4 }
 0x80e   :  { %v344_v39 = vpop.permute.xlu0 %343 }
 0x80f   :  { %346 = vst.msk [vmem:[#allocation3 + $0x2] sm:$0x1] %vm211_vm10, %v344_v39  ;;  %800 = vmatmul.msk.f32.vlgmr.msrb.gmra.mxu2 %vm119_vm2, %v344_v39 }
 0x892   :  { %v367_v41 = vpop.f32.mrf.mxu2 }
 0x893   :  { %v370_v42 = vadd.f32 %v367_v41, %v347_v40 }
 0x895   :  { %v801_v43 = vmul.f32 -1.442695, %v370_v42 }
 0x897   :  { %862 = vpow2.f32 %v801_v43 }
 0x89d   :  { %v863_v44 = vpop.eup %862 }
 0x89e   :  { %v375_v45 = vadd.f32 1.0, %v863_v44 }
 0x8a0   :  { %864 = vrcp.f32 %v375_v45  ;;  %v387_v49 = vand.u32 2147483648, %v375_v45  ;;  %v385_v51 = vand.u32 2147483647, %v375_v45  ;;  %vm381_vm7 = vweird.f32 %v375_v45 }
 0x8a1   :  { %866 = vtanh.f32 %v370_v42 }
 0x8a2   :  { %v388_v53 = vor.u32 1.1754944e-38, %v387_v49  ;;  %vm386_vm9 = vcmp.eq.f32.partialorder %v385_v51, 8.507059e+37 }
 0x8a6   :  { %v865_v46 = vpop.eup %864 }
 0x8a7   :  { %v377_v47 = vmul.f32 %v865_v46, %v375_v45  ;;  %vm382_vm5 = vweird.f32 %v865_v46  ;;  %v867_v55 = vpop.eup %866 }
 0x8a8   :  { %vm383_vm8 = vmor %vm381_vm7, %vm382_vm5 }
 0x8a9   :  { %v378_v48 = vsub.f32 1.0, %v377_v47 }
 0x8ab   :  { %v379_v50 = vmul.f32 %v865_v46, %v378_v48 }
 0x8ad   :  { %v380_v52 = vadd.f32 %v865_v46, %v379_v50 }
 0x8af   :  { %v384_v54 = vsel %vm383_vm8, %v865_v46, %v380_v52 }
 0x8b0   :  { %v389_v56 = vsel %vm386_vm9, %v388_v53, %v384_v54 }
 0x8b1   :  { %v391_v57 = vsel %vm1113_vm6, %v867_v55, %v389_v56 }
 0x8b2   :  { %394 = vrot.lane.b32.xlu1 %v391_v57, %s989_s17  ;;  %v392_v60 = vmul.f32 %v391_v57, %v335_v35 }
 0x924   :  { %v395_v58 = vpop.permute.xlu1 %394 }
 0x925   :  { %v397_v59 = vmul.f32 %v395_v58, %v391_v57  ;;  %v548_v58 = vld [vmem:[#allocation2 + $0x6] sm:$0x1] }
 0x927   :  { %399 = vrot.lane.b32.xlu2 %v397_v59, %s996_s4 }
 0x981   :  { %v400_v61 = vpop.permute.xlu2 %399 }
 0x982   :  { %v402_v62 = vadd.f32 %v400_v61, %v392_v60 }
 0x984   :  { %868 = vtanh.f32 %v402_v62 }
 0x98a   :  { %v869_v63 = vpop.eup %868 }
 0x98b   :  { %405 = vrot.lane.b32.xlu0 %v869_v63, %s989_s17 }
 0x9fd   :  { %v406_v0 = vpop.permute.xlu0 %405 }
 0x9fe   :  { %v408_v1 = vmul.f32 %v406_v0, %v391_v57 }
 0xa00   :  { %410 = vrot.lane.b32.xlu1 %v408_v1, %s996_s4 }
 0xa72   :  { %v411_v2 = vpop.permute.xlu1 %410 }
 0xa73   :  { %413 = vst.msk [vmem:[#allocation3 + $0x3] sm:$0x1] %vm211_vm10, %v411_v2  ;;  %802 = vmatmul.msk.f32.vlgmr.msra.gmra.mxu3 %vm119_vm2, %v411_v2 }
 0xaf6   :  { %v434_v4 = vpop.f32.mrf.mxu3 }
 0xaf7   :  { %v437_v5 = vadd.f32 %v434_v4, %v414_v3 }
 0xaf9   :  { %v803_v6 = vmul.f32 -1.442695, %v437_v5 }
 0xafb   :  { %870 = vpow2.f32 %v803_v6 }
 0xb01   :  { %v871_v7 = vpop.eup %870 }
 0xb02   :  { %v442_v8 = vadd.f32 1.0, %v871_v7 }
 0xb04   :  { %872 = vrcp.f32 %v442_v8  ;;  %v454_v12 = vand.u32 2147483648, %v442_v8  ;;  %v452_v14 = vand.u32 2147483647, %v442_v8  ;;  %vm448_vm12 = vweird.f32 %v442_v8 }
 0xb05   :  { %874 = vtanh.f32 %v437_v5 }
 0xb06   :  { %v455_v16 = vor.u32 1.1754944e-38, %v454_v12  ;;  %vm453_vm14 = vcmp.eq.f32.partialorder %v452_v14, 8.507059e+37 }
 0xb0a   :  { %v873_v9 = vpop.eup %872 }
 0xb0b   :  { %v444_v10 = vmul.f32 %v873_v9, %v442_v8  ;;  %vm449_vm11 = vweird.f32 %v873_v9  ;;  %v875_v18 = vpop.eup %874 }
 0xb0c   :  { %vm450_vm13 = vmor %vm448_vm12, %vm449_vm11 }
 0xb0d   :  { %v445_v11 = vsub.f32 1.0, %v444_v10 }
 0xb0f   :  { %v446_v13 = vmul.f32 %v873_v9, %v445_v11 }
 0xb11   :  { %v447_v15 = vadd.f32 %v873_v9, %v446_v13 }
 0xb13   :  { %v451_v17 = vsel %vm450_vm13, %v873_v9, %v447_v15 }
 0xb14   :  { %v456_v19 = vsel %vm453_vm14, %v455_v16, %v451_v17 }
 0xb15   :  { %v458_v20 = vsel %vm1113_vm6, %v875_v18, %v456_v19 }
 0xb16   :  { %461 = vrot.lane.b32.xlu2 %v458_v20, %s989_s17  ;;  %v459_v23 = vmul.f32 %v458_v20, %v402_v62 }
 0xb70   :  { %v462_v21 = vpop.permute.xlu2 %461 }
 0xb71   :  { %v464_v22 = vmul.f32 %v462_v21, %v458_v20  ;;  %v615_v21 = vld [vmem:[#allocation2 + $0x7] sm:$0x1] }
 0xb73   :  { %466 = vrot.lane.b32.xlu0 %v464_v22, %s996_s4 }
 0xbe5   :  { %v467_v24 = vpop.permute.xlu0 %466 }
 0xbe6   :  { %v469_v25 = vadd.f32 %v467_v24, %v459_v23 }
 0xbe8   :  { %876 = vtanh.f32 %v469_v25 }
 0xbee   :  { %v877_v26 = vpop.eup %876 }
 0xbef   :  { %472 = vrot.lane.b32.xlu1 %v877_v26, %s989_s17 }
 0xc61   :  { %v473_v27 = vpop.permute.xlu1 %472 }
 0xc62   :  { %v475_v28 = vmul.f32 %v473_v27, %v458_v20 }
 0xc64   :  { %477 = vrot.lane.b32.xlu2 %v475_v28, %s996_s4 }
 0xcbe   :  { %v478_v29 = vpop.permute.xlu2 %477 }
 0xcbf   :  { %480 = vst.msk [vmem:[#allocation3 + $0x4] sm:$0x1] %vm211_vm10, %v478_v29  ;;  %804 = vmatmul.msk.f32.vlgmr.msrb.gmra.mxu0 %vm119_vm2, %v478_v29 }
 0xd3c   :  { %v501_v31 = vpop.f32.mrf.mxu0 }
 0xd3d   :  { %v504_v32 = vadd.f32 %v501_v31, %v481_v30 }
 0xd3f   :  { %v805_v34 = vmul.f32 -1.442695, %v504_v32 }
 0xd41   :  { %878 = vpow2.f32 %v805_v34 }
 0xd47   :  { %v879_v35 = vpop.eup %878 }
 0xd48   :  { %v509_v36 = vadd.f32 1.0, %v879_v35 }
 0xd4a   :  { %880 = vrcp.f32 %v509_v36  ;;  %v521_v40 = vand.u32 2147483648, %v509_v36  ;;  %v519_v42 = vand.u32 2147483647, %v509_v36  ;;  %vm515_vm1 = vweird.f32 %v509_v36 }
 0xd4b   :  { %882 = vtanh.f32 %v504_v32 }
 0xd4c   :  { %v522_v44 = vor.u32 1.1754944e-38, %v521_v40  ;;  %vm520_vm4 = vcmp.eq.f32.partialorder %v519_v42, 8.507059e+37 }
 0xd50   :  { %v881_v37 = vpop.eup %880 }
 0xd51   :  { %v511_v38 = vmul.f32 %v881_v37, %v509_v36  ;;  %vm516_vm15 = vweird.f32 %v881_v37  ;;  %v883_v46 = vpop.eup %882 }
 0xd52   :  { %vm517_vm3 = vmor %vm515_vm1, %vm516_vm15 }
 0xd53   :  { %v512_v39 = vsub.f32 1.0, %v511_v38 }
 0xd55   :  { %v513_v41 = vmul.f32 %v881_v37, %v512_v39 }
 0xd57   :  { %v514_v43 = vadd.f32 %v881_v37, %v513_v41 }
 0xd59   :  { %v518_v45 = vsel %vm517_vm3, %v881_v37, %v514_v43 }
 0xd5a   :  { %v523_v47 = vsel %vm520_vm4, %v522_v44, %v518_v45 }
 0xd5b   :  { %v525_v48 = vsel %vm1113_vm6, %v883_v46, %v523_v47 }
 0xd5c   :  { %528 = vrot.lane.b32.xlu0 %v525_v48, %s989_s17  ;;  %v526_v51 = vmul.f32 %v525_v48, %v469_v25 }
 0xdce   :  { %v529_v49 = vpop.permute.xlu0 %528 }
 0xdcf   :  { %v531_v50 = vmul.f32 %v529_v49, %v525_v48 }
 0xdd1   :  { %533 = vrot.lane.b32.xlu1 %v531_v50, %s996_s4 }
 0xe43   :  { %v534_v52 = vpop.permute.xlu1 %533 }
 0xe44   :  { %v536_v53 = vadd.f32 %v534_v52, %v526_v51  ;;  %v837_v52 = vld [vmem:[%s1212_s6] ss:$0 sm:$0xff]  ;;  %s998_s6 = smov 111  }
 0xe46   :  { %884 = vtanh.f32 %v536_v53 }
 0xe4c   :  { %v885_v54 = vpop.eup %884 }
 0xe4d   :  { %539 = vrot.lane.b32.xlu2 %v885_v54, %s989_s17 }
 0xea7   :  { %v540_v55 = vpop.permute.xlu2 %539 }
 0xea8   :  { %v542_v56 = vmul.f32 %v540_v55, %v525_v48  ;;  %v821_v48 = vld [vmem:[%s1211_s5] sm:$0xff]  ;;  %s997_s5 = smov 112  }
 0xea9   :  { %714 = vmatpush.bf16.msrb.mxu3 %v821_v48 }
 0xeaa   :  { %544 = vrot.lane.b32.xlu0 %v542_v56, %s996_s4 }
 0xf1c   :  { %v545_v57 = vpop.permute.xlu0 %544 }
 0xf1d   :  { %547 = vst.msk [vmem:[#allocation3 + $0x5] sm:$0x1] %vm211_vm10, %v545_v57  ;;  %806 = vmatmul.msk.f32.vlgmr.msrb.gmra.mxu1 %vm119_vm2, %v545_v57 }
 0xf9a   :  { %v568_v59 = vpop.f32.mrf.mxu1 }
 0xf9b   :  { %v571_v60 = vadd.f32 %v568_v59, %v548_v58 }
 0xf9d   :  { %v807_v61 = vmul.f32 -1.442695, %v571_v60 }
 0xf9f   :  { %886 = vpow2.f32 %v807_v61 }
 0xfa5   :  { %v887_v62 = vpop.eup %886 }
 0xfa6   :  { %v576_v63 = vadd.f32 1.0, %v887_v62 }
 0xfa8   :  { %888 = vrcp.f32 %v576_v63  ;;  %v588_v3 = vand.u32 2147483648, %v576_v63  ;;  %v586_v5 = vand.u32 2147483647, %v576_v63  ;;  %vm582_vm7 = vweird.f32 %v576_v63 }
 0xfa9   :  { %890 = vtanh.f32 %v571_v60 }
 0xfaa   :  { %v589_v7 = vor.u32 1.1754944e-38, %v588_v3  ;;  %vm587_vm9 = vcmp.eq.f32.partialorder %v586_v5, 8.507059e+37 }
 0xfae   :  { %v889_v0 = vpop.eup %888 }
 0xfaf   :  { %v578_v1 = vmul.f32 %v889_v0, %v576_v63  ;;  %vm583_vm5 = vweird.f32 %v889_v0  ;;  %v891_v9 = vpop.eup %890 }
 0xfb0   :  { %vm584_vm8 = vmor %vm582_vm7, %vm583_vm5 }
 0xfb1   :  { %v579_v2 = vsub.f32 1.0, %v578_v1 }
 0xfb3   :  { %v580_v4 = vmul.f32 %v889_v0, %v579_v2 }
 0xfb5   :  { %v581_v6 = vadd.f32 %v889_v0, %v580_v4 }
 0xfb7   :  { %v585_v8 = vsel %vm584_vm8, %v889_v0, %v581_v6 }
 0xfb8   :  { %v590_v10 = vsel %vm587_vm9, %v589_v7, %v585_v8 }
 0xfb9   :  { %v592_v11 = vsel %vm1113_vm6, %v891_v9, %v590_v10 }
 0xfba   :  { %595 = vrot.lane.b32.xlu1 %v592_v11, %s989_s17  ;;  %v593_v14 = vmul.f32 %v592_v11, %v536_v53 }
0x102c   :  { %v596_v12 = vpop.permute.xlu1 %595 }
0x102d   :  { %v598_v13 = vmul.f32 %v596_v12, %v592_v11 }
0x102f   :  { %600 = vrot.lane.b32.xlu2 %v598_v13, %s996_s4 }
0x1089   :  { %v601_v15 = vpop.permute.xlu2 %600 }
0x108a   :  { %v603_v16 = vadd.f32 %v601_v15, %v593_v14 }
0x108c   :  { %892 = vtanh.f32 %v603_v16 }
0x1092   :  { %v893_v17 = vpop.eup %892 }
0x1093   :  { %606 = vrot.lane.b32.xlu0 %v893_v17, %s989_s17 }
0x1105   :  { %v607_v18 = vpop.permute.xlu0 %606 }
0x1106   :  { %v609_v19 = vmul.f32 %v607_v18, %v592_v11 }
0x1108   :  { %611 = vrot.lane.b32.xlu1 %v609_v19, %s996_s4 }
0x117a   :  { %v612_v20 = vpop.permute.xlu1 %611 }
0x117b   :  { %614 = vst.msk [vmem:[#allocation3 + $0x6] sm:$0x1] %vm211_vm10, %v612_v20  ;;  %808 = vmatmul.msk.f32.vlgmr.msra.gmra.mxu2 %vm119_vm2, %v612_v20 }
0x11fe   :  { %v635_v22 = vpop.f32.mrf.mxu2 }
0x11ff   :  { %v638_v23 = vadd.f32 %v635_v22, %v615_v21 }
0x1201   :  { %v809_v24 = vmul.f32 -1.442695, %v638_v23 }
0x1203   :  { %894 = vpow2.f32 %v809_v24 }
0x1209   :  { %v895_v25 = vpop.eup %894 }
0x120a   :  { %v643_v26 = vadd.f32 1.0, %v895_v25 }
0x120c   :  { %896 = vrcp.f32 %v643_v26  ;;  %v655_v30 = vand.u32 2147483648, %v643_v26  ;;  %v653_v32 = vand.u32 2147483647, %v643_v26  ;;  %vm649_vm12 = vweird.f32 %v643_v26 }
0x120d   :  { %898 = vtanh.f32 %v638_v23 }
0x120e   :  { %v656_v35 = vor.u32 1.1754944e-38, %v655_v30  ;;  %vm654_vm14 = vcmp.eq.f32.partialorder %v653_v32, 8.507059e+37 }
0x1212   :  { %v897_v27 = vpop.eup %896 }
0x1213   :  { %v645_v28 = vmul.f32 %v897_v27, %v643_v26  ;;  %vm650_vm11 = vweird.f32 %v897_v27  ;;  %v899_v37 = vpop.eup %898 }
0x1214   :  { %vm651_vm13 = vmor %vm649_vm12, %vm650_vm11 }
0x1215   :  { %v646_v29 = vsub.f32 1.0, %v645_v28 }
0x1217   :  { %v647_v31 = vmul.f32 %v897_v27, %v646_v29 }
0x1219   :  { %v648_v34 = vadd.f32 %v897_v27, %v647_v31 }
0x121b   :  { %v652_v36 = vsel %vm651_vm13, %v897_v27, %v648_v34 }
0x121c   :  { %v657_v38 = vsel %vm654_vm14, %v656_v35, %v652_v36 }
0x121d   :  { %v659_v39 = vsel %vm1113_vm6, %v899_v37, %v657_v38  ;;  %vm752_vm6 = vcmask 7168  }
0x121e   :  { %662 = vrot.lane.b32.xlu2 %v659_v39, %s989_s17  ;;  %v660_v42 = vmul.f32 %v659_v39, %v603_v16 }
0x1278   :  { %v663_v40 = vpop.permute.xlu2 %662 }
0x1279   :  { %v665_v41 = vmul.f32 %v663_v40, %v659_v39 }
0x127b   :  { %667 = vrot.lane.b32.xlu0 %v665_v41, %s996_s4 }
0x12ed   :  { %v668_v43 = vpop.permute.xlu0 %667 }
0x12ee   :  { %v670_v44 = vadd.f32 %v668_v43, %v660_v42 }
0x12f0   :  { %900 = vtanh.f32 %v670_v44 }
0x12f6   :  { %v901_v45 = vpop.eup %900 }
0x12f7   :  { %673 = vrot.lane.b32.xlu1 %v901_v45, %s989_s17  ;;  %s763_s17 = sshll.u32 %s999_s16, 4  ;;  %s764_s17 = int_to_ptr.vmem [resolvable:$true] %s763_s17 }
0x1369   :  { %v674_v46 = vpop.permute.xlu1 %673 }
0x136a   :  { %v676_v47 = vmul.f32 %v674_v46, %v659_v39 }
0x136c   :  { %678 = vrot.lane.b32.xlu2 %v676_v47, %s996_s4 }
0x13c6   :  { %v679_v49 = vpop.permute.xlu2 %678 }
0x13c7   :  { %681 = vst.msk [vmem:[#allocation3 + $0x7] sm:$0x1] %vm211_vm10, %v679_v49 }
0x13ce   :  { %v682_v50 = vld [vmem:[#allocation3] sm:$0xff] }
0x13cf   :  { %v683_v51 = vpack.c.bf16 %v682_v50, %v682_v50 }
0x13d1   :  { %818 = vmatmul.msk.bf16.vlgmr.msrb.gmra.mxu3 %vm119_vm2, %v683_v51 }
0x1454   :  { %v716_v53 = vpop.f32.mrf.mxu3 }
0x1455   :  { %v717_v54 = vadd.f32 %v837_v52, %v716_v53 }
0x1457   :  { %v734_v55 = vand.u32 2147483647, %v717_v54  ;;  %v720_v56 = vsel %vm74_vm0, %v717_v54, -inf  ;;  %v733_v4 = vmax.f32 %v717_v54, 0.0 }
0x1458   :  { %721 = vmax.xlane.f32.xlu0 %v720_v56 }
0x1459   :  { %v735_v57 = vsub.f32 0.0, %v734_v55 }
0x145b   :  { %v736_v58 = vmul.f32 1.442695, %v735_v57 }
0x145c   :  { %v718_v59 = vpop.f32.mrf.mxu3 }
0x145d   :  { %902 = vpow2.f32 %v736_v58 }
0x1463   :  { %v903_v60 = vpop.eup %902 }
0x1464   :  { %v738_v61 = vadd.f32 1.0, %v903_v60  ;;  %v741_v62 = vmul.f32 -0.5, %v903_v60  ;;  %v744_v0 = vand.u32 2147483647, %v903_v60 }
0x1466   :  { %904 = vlog2.f32 %v738_v61  ;;  %v742_v63 = vadd.f32 1.0, %v741_v62  ;;  %vm745_vm2 = vcmp.lt.f32.partialorder %v744_v0, 0.0004427343 }
0x1468   :  { %v743_v3 = vmul.f32 %v903_v60, %v742_v63 }
0x146c   :  { %v905_v1 = vpop.eup %904 }
0x146d   :  { %v740_v2 = vmul.f32 0.6931472, %v905_v1 }
0x146f   :  { %v746_v5 = vsel %vm745_vm2, %v743_v3, %v740_v2 }
0x1470   :  { %v747_v6 = vadd.f32 %v746_v5, %v733_v4 }
0x1472   :  { %749 = vrot.lane.b32.xlu2 %v747_v6, %s997_s5 }
0x147a   :  { %754 = vrot.lane.b32.xlu2 %v747_v6, %s998_s6 }
0x14cb   :  { %v722_v7 = vpop.xlane.xlu0 %721 }
0x14cc   :  { %v723_v8 = vsub.f32 %v717_v54, %v722_v7  ;;  %v750_v9 = vpop.permute.xlu2 %749 }
0x14cd   :  { %753 = vst.msk [vmem:[%s1214_s8] sm:$0xff] %vm752_vm6, %v750_v9  ;;  %s765_s8 = sshll.u32 %s1213_s7, 4  ;;  %s766_s8 = int_to_ptr.hbm [resolvable:$true] %s765_s8 }
0x14ce   :  { %v724_v10 = vmul.f32 1.442695, %v723_v8 }
0x14d0   :  { %906 = vpow2.f32 %v724_v10 }
0x14d4   :  { %v755_v11 = vpop.permute.xlu2 %754 }
0x14d5   :  { %757 = vst.msk [vmem:[%s1215_s9] sm:$0xff] %vm752_vm6, %v755_v11 }
0x14d6   :  { %v907_v12 = vpop.eup %906 }
0x14d7   :  { %v726_v13 = vsel %vm74_vm0, %v907_v12, 0.0 }
0x14d8   :  { %727 = vadd.xlane.f32.xlu1 %v726_v13 }
0x154b   :  { %v728_v14 = vpop.xlane.xlu1 %727 }
0x154c   :  { %908 = vlog2.f32 %v728_v14 }
0x1552   :  { %v909_v15 = vpop.eup %908 }
0x1553   :  { %v730_v16 = vmul.f32 0.6931472, %v909_v15 }
0x1555   :  { %v731_v17 = vsub.f32 %v723_v8, %v730_v16 }
0x1557   :  { %732 = vst.msk [vmem:[#allocation9] sm:$0xff] %vm74_vm0, %v731_v17 }
0x1558   :  { %768 = dma.vmem_to_hbm [thread:$0]  %s764_s17, 128, %s766_s8, [#allocation6]  }
0x1559   :  { %986 = dma.done.wait [#allocation6], 128  }
0x155a   :  { %987 = vsyncadd [#allocation6], 4294967168 }
0x155b   :  { %781 = vsyncpa [#allocation5], 1 }
0x155c   :  { %782 = vsyncpa [#allocation8], 1 }
0x155d   :  { %783 = vsyncpa [#allocation6], 1 }

</bundles_post_ra>
